<compile_context>
chip_gen: v7x
topology: tpu7x:2x2x1
jax: 0.10.0
libtpu: 0.0.40
codegen_flags: <defaults>
</compile_context>

<pallas_src>
import jax
import jax.numpy as jnp
from jax.experimental import pallas as pl
from jax.experimental.pallas import tpu as pltpu

NEG_SLOPE = 0.01   # nn.LeakyReLU() default
LANE = 128         # TPU lane width; every feature dim padded to this


def _leaky_relu(x):
    return jnp.where(x > 0, x, NEG_SLOPE * x)


def _round_up(n, m):
    return ((n + m - 1) // m) * m


def mlp_kernel(x_ref, w_ref, b_ref, o_ref):
    """One (TILE_B, 128) batch tile through the 4-layer MLP, fully in VMEM.

    x_ref : (TILE_B, 128)   f32   input features zero-padded to 128 lanes
    w_ref : (4, 128, 128)   bf16  stacked, zero-padded layer weights (resident)
    b_ref : (8, 128)        f32   rows 0..3 = biases of layers 1..4 (resident)
    o_ref : (TILE_B, 128)   f32   cols >= n_classes are zero
    """
    # Layer 1 + LeakyReLU   (dropout p=0.2: identity in eval mode)
    h = jnp.dot(x_ref[...].astype(jnp.bfloat16), w_ref[0],
                preferred_element_type=jnp.float32) + b_ref[0:1, :]
    h = _leaky_relu(h)
    # Layer 2 + LeakyReLU
    h = jnp.dot(h.astype(jnp.bfloat16), w_ref[1],
                preferred_element_type=jnp.float32) + b_ref[1:2, :]
    h = _leaky_relu(h)
    # Layer 3 + LeakyReLU
    h = jnp.dot(h.astype(jnp.bfloat16), w_ref[2],
                preferred_element_type=jnp.float32) + b_ref[2:3, :]
    h = _leaky_relu(h)
    # Output layer (no activation)
    out = jnp.dot(h.astype(jnp.bfloat16), w_ref[3],
                  preferred_element_type=jnp.float32) + b_ref[3:4, :]
    o_ref[...] = out.astype(o_ref.dtype)


def mlp_forward(x, params, *, tile_b=256):
    """x: (B, d_in) float32.  params: weights (in,out) f32, biases (1,out) f32."""
    B, d_in = x.shape
    n_classes = params["w4"].shape[1]

    # Tile sizing: multiple of 16 (bf16 sublane packing), <= tile_b default.
    tile_b = min(tile_b, _round_up(max(B, 1), 16))
    B_pad = _round_up(B, tile_b)

    # --- lane-dense, zero-padded operands ------------------------------------
    x_pad = jnp.zeros((B_pad, LANE), jnp.float32).at[:B, :d_in].set(x)

    w_stack = jnp.zeros((4, LANE, LANE), jnp.bfloat16)
    biases = jnp.zeros((8, LANE), jnp.float32)
    for i in range(1, 5):
        w = params[f"w{i}"]
        wi, wo = w.shape
        w_stack = w_stack.at[i - 1, :wi, :wo].set(w.astype(jnp.bfloat16))
        b = params[f"b{i}"].reshape(-1)
        biases = biases.at[i - 1, : b.shape[0]].set(b)

    # --- pallas call ----------------------------------------------------------
    grid = (B_pad // tile_b,)

    out_pad = pl.pallas_call(
        mlp_kernel,
        out_shape=jax.ShapeDtypeStruct((B_pad, LANE), jnp.float32),
        grid=grid,
        in_specs=[
            pl.BlockSpec((tile_b, LANE), lambda i: (i, 0)),        # x: batch-tiled
            pl.BlockSpec((4, LANE, LANE), lambda i: (0, 0, 0)),    # stacked weights (resident)
            pl.BlockSpec((8, LANE), lambda i: (0, 0)),             # packed biases (resident)
        ],
        out_specs=pl.BlockSpec((tile_b, LANE), lambda i: (i, 0)),
        compiler_params=pltpu.CompilerParams(
            dimension_semantics=("parallel",)),                     # megacore on v7x
    )(x_pad, w_stack, biases)

    return out_pad[:B, :n_classes]


# ------------------------------ references -----------------------------------
def init_params(key, d_in, n_classes):
    """Deterministic init mirroring nn.Linear's uniform(-1/sqrt(fan_in), ...)."""
    dims = [(d_in, 128), (128, 64), (64, 32), (32, n_classes)]
    params = {}
    keys = jax.random.split(key, 2 * len(dims))
    for i, (fi, fo) in enumerate(dims):
        bound = 1.0 / jnp.sqrt(fi)
        params[f"w{i+1}"] = jax.random.uniform(keys[2 * i], (fi, fo),
                                               jnp.float32, -bound, bound)
        params[f"b{i+1}"] = jax.random.uniform(keys[2 * i + 1], (1, fo),
                                               jnp.float32, -bound, bound)
    return params


def mlp_reference_f32(x, params):
    h = x
    for i in range(1, 4):
        h = _leaky_relu(h @ params[f"w{i}"] + params[f"b{i}"])
    return h @ params["w4"] + params["b4"]


def mlp_reference_bf16(x, params):
    """Mimics the kernel's bf16-input / f32-accumulate matmuls."""
    h = x
    for i in range(1, 4):
        h = jnp.dot(h.astype(jnp.bfloat16), params[f"w{i}"].astype(jnp.bfloat16),
                    preferred_element_type=jnp.float32) + params[f"b{i}"]
        h = _leaky_relu(h)
    return jnp.dot(h.astype(jnp.bfloat16), params["w4"].astype(jnp.bfloat16),
                   preferred_element_type=jnp.float32) + params["b4"]


if __name__ == "__main__":
    key = jax.random.PRNGKey(0)
    k_x, k_p = jax.random.split(key)

    B, D_IN, N_CLASSES = 8, 16, 4   # X_train.shape[1]=16 features, 4 classes
    x = jax.random.normal(k_x, (B, D_IN), jnp.float32)
    params = init_params(k_p, D_IN, N_CLASSES)

    out = mlp_forward(x, params)
    out = jax.block_until_ready(out)
    assert out.shape == (B, N_CLASSES)

    # Matches the bf16-MXU-input math tightly...
    ref_bf16 = mlp_reference_bf16(x, params)
    assert jnp.allclose(out, ref_bf16, atol=1e-3, rtol=1e-3), "mismatch vs bf16 reference"
    # ...and the full-f32 PyTorch-equivalent forward within bf16 rounding.
    ref_f32 = mlp_reference_f32(x, params)
    assert jnp.allclose(out, ref_f32, atol=5e-2, rtol=5e-2), "mismatch vs f32 reference"

    print("KERNEL_OK")
</pallas_src>

<mosaic_0001>
module attributes {stable_mosaic.version = 11 : i64} {
  func.func @mlp_kernel(%arg0: i32, %arg1: memref<16x128xf32, #tpu.memory_space<vmem>>, %arg2: memref<4x128x128xbf16, #tpu.memory_space<vmem>>, %arg3: memref<8x128xf32, #tpu.memory_space<vmem>>, %arg4: memref<16x128xf32, #tpu.memory_space<vmem>>) attributes {dimension_semantics = [#tpu.dimension_semantics<parallel>], iteration_bounds = array<i64: 1>, scalar_prefetch = 0 : i64, scratch_operands = 0 : i64, tpu.core_type = #tpu.core_type<tc>, window_params = [{transform_indices = @transform_0, window_bounds = array<i64: 16, 128>}, {pipeline_mode = #tpu.pipeline_mode<synchronous>, transform_indices = @transform_1, window_bounds = array<i64: 4, 128, 128>}, {pipeline_mode = #tpu.pipeline_mode<synchronous>, transform_indices = @transform_2, window_bounds = array<i64: 8, 128>}, {transform_indices = @transform_3, window_bounds = array<i64: 16, 128>}]} {
    %c0 = arith.constant 0 : index
    %c0_0 = arith.constant 0 : index
    %0 = vector.load %arg1[%c0, %c0_0] : memref<16x128xf32, #tpu.memory_space<vmem>>, vector<16x128xf32>
    %1 = arith.truncf %0 : vector<16x128xf32> to vector<16x128xbf16>
    %c0_1 = arith.constant 0 : index
    %c0_2 = arith.constant 0 : index
    %c0_3 = arith.constant 0 : index
    %2 = vector.load %arg2[%c0_1, %c0_2, %c0_3] : memref<4x128x128xbf16, #tpu.memory_space<vmem>>, vector<1x128x128xbf16>
    %3 = vector.shape_cast %2 : vector<1x128x128xbf16> to vector<128x128xbf16>
    %cst = arith.constant dense<0.000000e+00> : vector<16x128xf32>
    %4 = tpu.matmul %1, %3, %cst {dimension_numbers = #tpu.dot_dimension_numbers<[1], [0], [0], [1], [0, 0, 1, 1], [], []>} : vector<16x128xbf16>, vector<128x128xbf16>, vector<16x128xf32> -> vector<16x128xf32>
    %c0_4 = arith.constant 0 : index
    %c0_5 = arith.constant 0 : index
    %5 = vector.load %arg3[%c0_4, %c0_5] : memref<8x128xf32, #tpu.memory_space<vmem>>, vector<1x128xf32>
    %6 = vector.broadcast %5 : vector<1x128xf32> to vector<16x128xf32>
    %7 = arith.addf %4, %6 : vector<16x128xf32>
    %cst_6 = arith.constant 0.000000e+00 : f32
    %8 = vector.broadcast %cst_6 : f32 to vector<16x128xf32>
    %9 = arith.cmpf ogt, %7, %8 : vector<16x128xf32>
    %cst_7 = arith.constant 0.00999999977 : f32
    %10 = vector.broadcast %cst_7 : f32 to vector<16x128xf32>
    %11 = arith.mulf %10, %7 : vector<16x128xf32>
    %12 = arith.select %9, %7, %11 : vector<16x128xi1>, vector<16x128xf32>
    %13 = arith.truncf %12 : vector<16x128xf32> to vector<16x128xbf16>
    %c1 = arith.constant 1 : index
    %c0_8 = arith.constant 0 : index
    %c0_9 = arith.constant 0 : index
    %14 = vector.load %arg2[%c1, %c0_8, %c0_9] : memref<4x128x128xbf16, #tpu.memory_space<vmem>>, vector<1x128x128xbf16>
    %15 = vector.shape_cast %14 : vector<1x128x128xbf16> to vector<128x128xbf16>
    %cst_10 = arith.constant dense<0.000000e+00> : vector<16x128xf32>
    %16 = tpu.matmul %13, %15, %cst_10 {dimension_numbers = #tpu.dot_dimension_numbers<[1], [0], [0], [1], [0, 0, 1, 1], [], []>} : vector<16x128xbf16>, vector<128x128xbf16>, vector<16x128xf32> -> vector<16x128xf32>
    %c1_11 = arith.constant 1 : index
    %c0_12 = arith.constant 0 : index
    %17 = vector.load %arg3[%c1_11, %c0_12] : memref<8x128xf32, #tpu.memory_space<vmem>>, vector<1x128xf32>
    %18 = vector.broadcast %17 : vector<1x128xf32> to vector<16x128xf32>
    %19 = arith.addf %16, %18 : vector<16x128xf32>
    %cst_13 = arith.constant 0.000000e+00 : f32
    %20 = vector.broadcast %cst_13 : f32 to vector<16x128xf32>
    %21 = arith.cmpf ogt, %19, %20 : vector<16x128xf32>
    %cst_14 = arith.constant 0.00999999977 : f32
    %22 = vector.broadcast %cst_14 : f32 to vector<16x128xf32>
    %23 = arith.mulf %22, %19 : vector<16x128xf32>
    %24 = arith.select %21, %19, %23 : vector<16x128xi1>, vector<16x128xf32>
    %25 = arith.truncf %24 : vector<16x128xf32> to vector<16x128xbf16>
    %c2 = arith.constant 2 : index
    %c0_15 = arith.constant 0 : index
    %c0_16 = arith.constant 0 : index
    %26 = vector.load %arg2[%c2, %c0_15, %c0_16] : memref<4x128x128xbf16, #tpu.memory_space<vmem>>, vector<1x128x128xbf16>
    %27 = vector.shape_cast %26 : vector<1x128x128xbf16> to vector<128x128xbf16>
    %cst_17 = arith.constant dense<0.000000e+00> : vector<16x128xf32>
    %28 = tpu.matmul %25, %27, %cst_17 {dimension_numbers = #tpu.dot_dimension_numbers<[1], [0], [0], [1], [0, 0, 1, 1], [], []>} : vector<16x128xbf16>, vector<128x128xbf16>, vector<16x128xf32> -> vector<16x128xf32>
    %c2_18 = arith.constant 2 : index
    %c0_19 = arith.constant 0 : index
    %29 = vector.load %arg3[%c2_18, %c0_19] : memref<8x128xf32, #tpu.memory_space<vmem>>, vector<1x128xf32>
    %30 = vector.broadcast %29 : vector<1x128xf32> to vector<16x128xf32>
    %31 = arith.addf %28, %30 : vector<16x128xf32>
    %cst_20 = arith.constant 0.000000e+00 : f32
    %32 = vector.broadcast %cst_20 : f32 to vector<16x128xf32>
    %33 = arith.cmpf ogt, %31, %32 : vector<16x128xf32>
    %cst_21 = arith.constant 0.00999999977 : f32
    %34 = vector.broadcast %cst_21 : f32 to vector<16x128xf32>
    %35 = arith.mulf %34, %31 : vector<16x128xf32>
    %36 = arith.select %33, %31, %35 : vector<16x128xi1>, vector<16x128xf32>
    %37 = arith.truncf %36 : vector<16x128xf32> to vector<16x128xbf16>
    %c3 = arith.constant 3 : index
    %c0_22 = arith.constant 0 : index
    %c0_23 = arith.constant 0 : index
    %38 = vector.load %arg2[%c3, %c0_22, %c0_23] : memref<4x128x128xbf16, #tpu.memory_space<vmem>>, vector<1x128x128xbf16>
    %39 = vector.shape_cast %38 : vector<1x128x128xbf16> to vector<128x128xbf16>
    %cst_24 = arith.constant dense<0.000000e+00> : vector<16x128xf32>
    %40 = tpu.matmul %37, %39, %cst_24 {dimension_numbers = #tpu.dot_dimension_numbers<[1], [0], [0], [1], [0, 0, 1, 1], [], []>} : vector<16x128xbf16>, vector<128x128xbf16>, vector<16x128xf32> -> vector<16x128xf32>
    %c3_25 = arith.constant 3 : index
    %c0_26 = arith.constant 0 : index
    %41 = vector.load %arg3[%c3_25, %c0_26] : memref<8x128xf32, #tpu.memory_space<vmem>>, vector<1x128xf32>
    %42 = vector.broadcast %41 : vector<1x128xf32> to vector<16x128xf32>
    %43 = arith.addf %40, %42 : vector<16x128xf32>
    %c0_27 = arith.constant 0 : index
    %c0_28 = arith.constant 0 : index
    %44 = vector.load %arg4[%c0_27, %c0_28] : memref<16x128xf32, #tpu.memory_space<vmem>>, vector<16x128xf32>
    tpu.vector_store %arg4[%c0_27, %c0_28], %43 {strides = array<i32>} : memref<16x128xf32, #tpu.memory_space<vmem>>, vector<16x128xf32>,
    return
  }
  func.func @transform_0(%arg0: i32) -> (i32, i32) {
    %c0_i32 = arith.constant 0 : i32
    %c0_i32_0 = arith.constant 0 : i32
    return %arg0, %c0_i32 : i32, i32
  }
  func.func @transform_1(%arg0: i32) -> (i32, i32, i32) {
    %c0_i32 = arith.constant 0 : i32
    %c0_i32_0 = arith.constant 0 : i32
    %c0_i32_1 = arith.constant 0 : i32
    %c0_i32_2 = arith.constant 0 : i32
    return %c0_i32, %c0_i32_0, %c0_i32_1 : i32, i32, i32
  }
  func.func @transform_2(%arg0: i32) -> (i32, i32) {
    %c0_i32 = arith.constant 0 : i32
    %c0_i32_0 = arith.constant 0 : i32
    %c0_i32_1 = arith.constant 0 : i32
    return %c0_i32, %c0_i32_0 : i32, i32
  }
  func.func @transform_3(%arg0: i32) -> (i32, i32) {
    %c0_i32 = arith.constant 0 : i32
    %c0_i32_0 = arith.constant 0 : i32
    return %arg0, %c0_i32 : i32, i32
  }
}

</mosaic_0001>

<bundles_post_ra>
// kernel: tpu_custom_call.1
= control target key start
LH: loop header
LB: loop body
LE: loop exit
PB: predicated region body
PF: predicated region fallthrough
CT: control target
= control target key end

     0   :  { %8 = vsyncpa [#allocation3], 0  ;;  %s954_s0 = inlined_call_operand.hbm [shape: f32[16,128], index: 0, kind: input, shape index: {}]   ;;  %s955_s1 = inlined_call_operand.hbm [shape: bf16[4,128,128], index: 1, kind: input, shape index: {}]   ;;  %s956_s2 = inlined_call_operand.hbm [shape: f32[8,128], index: 2, kind: input, shape index: {}]   ;;  %s957_s3 = inlined_call_operand.hbm [shape: f32[16,128], index: 3, kind: output, shape index: {}]  }
   0x1   :  { %9 = vsyncpa [#allocation6], 0 }
   0x2   :  { %10 = vsyncpa [#allocation4], 0  ;;  %s830_s12 = smov [#allocation5]   ;;  %s736_s16 = scalar_lea.hbm %s955_s1, 4096 }
   0x3   :  { %s28_s13 = sshll.u32 %s830_s12, 4  ;;  %p737_p0 = scmp.ne.s32.totalorder %s955_s1, %s736_s16  ;;  %s29_s13 = int_to_ptr.vmem [resolvable:$true] %s28_s13 }
   0x4   :  { %p740_p1 = scmp.lt.u32.totalorder %s736_s16, %s955_s1 }
   0x6   :  { %p742_p2 = pnand %p740_p1, %p737_p0 }
   0x8   :  { %745 = shalt.err (!%p742_p2)
}
   0x9   :  { %s746_s21 = scalar_lea.vmem %s29_s13, 4096  ;;  %p751_p4 = scmp.lt.s32.totalorder %s29_s13, %s29_s13 }
   0xa   :  { %p747_p3 = scmp.ne.s32.totalorder %s29_s13, %s746_s21  ;;  %p752_p5 = scmp.lt.s32.totalorder %s746_s21, %s746_s21 }
   0xc   :  { %p753_p6 = por %p752_p5, %p751_p4 }
   0xe   :  { %p754_p7 = pnand %p753_p6, %p747_p3 }
  0x10   :  { %757 = shalt.err (!%p754_p7)
}
  0x11   :  { %s831_s22 = smov 64   ;;  %s832_s23 = smov 4  }
  0x12   :  { %34 = dma.hbm_to_vmem [thread:$0]  %s955_s1, 4096, %s29_s13, [#allocation6], %s831_s22, %s831_s22, %s832_s23  }
  0x13   :  { %s833_s26 = smov [#allocation2]   ;;  %s758_s30 = scalar_lea.hbm %s954_s0, 256 }
  0x14   :  { %s16_s27 = sshll.u32 %s833_s26, 4  ;;  %p759_p8 = scmp.ne.s32.totalorder %s954_s0, %s758_s30  ;;  %s17_s27 = int_to_ptr.vmem [resolvable:$true] %s16_s27 }
  0x15   :  { %p762_p9 = scmp.lt.u32.totalorder %s758_s30, %s954_s0 }
  0x17   :  { %p764_p10 = pnand %p762_p9, %p759_p8 }
  0x19   :  { %767 = shalt.err (!%p764_p10)
}
  0x1a   :  { %s768_s8 = scalar_lea.vmem %s17_s27, 256  ;;  %p773_p12 = scmp.lt.s32.totalorder %s17_s27, %s17_s27 }
  0x1b   :  { %p769_p11 = scmp.ne.s32.totalorder %s17_s27, %s768_s8  ;;  %p774_p13 = scmp.lt.s32.totalorder %s768_s8, %s768_s8 }
  0x1d   :  { %p775_p0 = por %p774_p13, %p773_p12 }
  0x1f   :  { %p776_p1 = pnand %p775_p0, %p769_p11 }
  0x21   :  { %779 = shalt.err (!%p776_p1)
}
  0x22   :  { %s834_s1 = smov 128   ;;  %s835_s9 = smov 8  }
  0x23   :  { %22 = dma.hbm_to_vmem [thread:$0]  %s954_s0, 256, %s17_s27, [#allocation3], %s834_s1, %s834_s1, %s835_s9  }
  0x24   :  { %s836_s12 = smov [#allocation7]   ;;  %s780_s16 = scalar_lea.hbm %s956_s2, 128 }
  0x25   :  { %s41_s13 = sshll.u32 %s836_s12, 4  ;;  %p781_p2 = scmp.ne.s32.totalorder %s956_s2, %s780_s16  ;;  %s42_s13 = int_to_ptr.vmem [resolvable:$true] %s41_s13 }
  0x26   :  { %p784_p3 = scmp.lt.u32.totalorder %s780_s16, %s956_s2 }
  0x28   :  { %p786_p4 = pnand %p784_p3, %p781_p2 }
  0x2a   :  { %789 = shalt.err (!%p786_p4)
}
  0x2b   :  { %s790_s21 = scalar_lea.vmem %s42_s13, 128  ;;  %p795_p6 = scmp.lt.s32.totalorder %s42_s13, %s42_s13 }
  0x2c   :  { %p791_p5 = scmp.ne.s32.totalorder %s42_s13, %s790_s21  ;;  %p796_p7 = scmp.lt.s32.totalorder %s790_s21, %s790_s21 }
  0x2e   :  { %p797_p8 = por %p796_p7, %p795_p6 }
  0x30   :  { %p798_p9 = pnand %p797_p8, %p791_p5 }
  0x32   :  { %801 = shalt.err (!%p798_p9)
}
  0x33   :  { %44 = dma.hbm_to_vmem [thread:$0]  %s956_s2, 128, %s42_s13, [#allocation6]  }
  0x34   :  { %824 = dma.done.wait [#allocation3], 256  }
  0x35   :  { %825 = vsyncadd [#allocation3], 4294967040 }
  0x36   :  { %826 = dma.done.wait [#allocation6], 4224  }
  0x37   :  { %827 = vsyncadd [#allocation6], 4294963072  ;;  %v837_v0 = vmov 0.0   ;;  %vm838_vm0 = vmmov 0   ;;  %v704_v1 = vld [vmem:[#allocation5] sm:$0xff]   ;;  %v705_v2 = vld [vmem:[#allocation5 + $0x8] sm:$0xff]  }
  0x38   :  { %614 = vmatprep.subr.bf16.mxu0 %v837_v0  ;;  %630 = vmatprep.mubr.msk.bf16.mxu0 %vm838_vm0, %v837_v0  ;;  %v706_v3 = vld [vmem:[#allocation5 + $0x10] sm:$0xff]   ;;  %v712_v4 = vld [vmem:[#allocation5 + $0x40] sm:$0xff]   ;;  %v707_v5 = vld [vmem:[#allocation5 + $0x18] sm:$0xff]   ;;  %s839_s2 = smov [#allocation8]  }
  0x39   :  { %634 = vmatprep.subr.bf16.mxu1 %v837_v0  ;;  %650 = vmatprep.mubr.msk.bf16.mxu1 %vm838_vm0, %v837_v0  ;;  %v713_v6 = vld [vmem:[#allocation5 + $0x48] sm:$0xff]   ;;  %v708_v7 = vld [vmem:[#allocation5 + $0x20] sm:$0xff]   ;;  %v714_v8 = vld [vmem:[#allocation5 + $0x50] sm:$0xff]   ;;  %s529_s23 = sshll.u32 %s839_s2, 4  ;;  %s530_s23 = int_to_ptr.vmem [resolvable:$true] %s529_s23 }
  0x3a   :  { %615 = vmatpush3.bf16.msra.mxu0 %v704_v1  ;;  %635 = vmatpush3.bf16.msra.mxu1 %v712_v4  ;;  %v709_v9 = vld [vmem:[#allocation5 + $0x28] sm:$0xff]   ;;  %v715_v10 = vld [vmem:[#allocation5 + $0x58] sm:$0xff]   ;;  %v710_v11 = vld [vmem:[#allocation5 + $0x30] sm:$0xff]   ;;  %s802_s24 = scalar_lea.vmem %s530_s23, 256  ;;  %p807_p11 = scmp.lt.s32.totalorder %s530_s23, %s530_s23 }
  0x3b   :  { %616 = vmatprep.subr.bf16.mxu0 %v837_v0  ;;  %636 = vmatprep.subr.bf16.mxu1 %v837_v0  ;;  %v716_v12 = vld [vmem:[#allocation5 + $0x60] sm:$0xff]   ;;  %v711_v13 = vld [vmem:[#allocation5 + $0x38] sm:$0xff]   ;;  %v55_v14 = vld [vmem:[#allocation2] sm:$0xff]  ;;  %p803_p10 = scmp.ne.s32.totalorder %s530_s23, %s802_s24  ;;  %p808_p12 = scmp.lt.s32.totalorder %s802_s24, %s802_s24 }
  0x3c   :  { %v56_v15 = vld [vmem:[#allocation2 + $0x8] sm:$0xff]  ;;  %v717_v16 = vld [vmem:[#allocation5 + $0x68] sm:$0xff]   ;;  %v718_v18 = vld [vmem:[#allocation5 + $0x70] sm:$0xff]  }
  0x3d   :  { %v57_v17 = vpack.c.bf16 %v56_v15, %v55_v14  ;;  %v719_v19 = vld [vmem:[#allocation5 + $0x78] sm:$0xff]   ;;  %v720_v20 = vld [vmem:[#allocation5 + $0x80] sm:$0xff]   ;;  %v721_v21 = vld [vmem:[#allocation5 + $0x88] sm:$0xff]   ;;  %p809_p13 = por %p808_p12, %p807_p11 }
  0x3e   :  { %617 = vmatpush3.bf16.msra.mxu0 %v705_v2  ;;  %637 = vmatpush3.bf16.msra.mxu1 %v713_v6  ;;  %v722_v22 = vld [vmem:[#allocation5 + $0x90] sm:$0xff]   ;;  %v723_v23 = vld [vmem:[#allocation5 + $0x98] sm:$0xff]   ;;  %v724_v24 = vld [vmem:[#allocation5 + $0xa0] sm:$0xff]  }
  0x3f   :  { %618 = vmatprep.subr.bf16.mxu0 %v837_v0  ;;  %638 = vmatprep.subr.bf16.mxu1 %v837_v0  ;;  %v725_v25 = vld [vmem:[#allocation5 + $0xa8] sm:$0xff]   ;;  %v542_v26 = vld [vmem:[#allocation7] ss:$0 sm:$0xff]  ;;  %v726_v38 = vld [vmem:[#allocation5 + $0xb0] sm:$0xff]   ;;  %p810_p0 = pnand %p809_p13, %p803_p10 }
  0x40   :  { %v727_v39 = vld [vmem:[#allocation5 + $0xb8] sm:$0xff]   ;;  %v728_v40 = vld [vmem:[#allocation5 + $0xc0] sm:$0xff]   ;;  %v729_v41 = vld [vmem:[#allocation5 + $0xc8] sm:$0xff]  }
  0x41   :  { %v730_v42 = vld [vmem:[#allocation5 + $0xd0] sm:$0xff]   ;;  %v731_v43 = vld [vmem:[#allocation5 + $0xd8] sm:$0xff]   ;;  %v732_v44 = vld [vmem:[#allocation5 + $0xe0] sm:$0xff]  }
  0x42   :  { %619 = vmatpush3.bf16.msra.mxu0 %v706_v3  ;;  %639 = vmatpush3.bf16.msra.mxu1 %v714_v8  ;;  %v733_v45 = vld [vmem:[#allocation5 + $0xe8] sm:$0xff]   ;;  %v551_v46 = vld [vmem:[#allocation7 + $0x1] ss:$0 sm:$0xff]  ;;  %v734_v58 = vld [vmem:[#allocation5 + $0xf0] sm:$0xff]  }
  0x43   :  { %620 = vmatprep.subr.bf16.mxu0 %v837_v0  ;;  %640 = vmatprep.subr.bf16.mxu1 %v837_v0  ;;  %v735_v59 = vld [vmem:[#allocation5 + $0xf8] sm:$0xff]   ;;  %v560_v60 = vld [vmem:[#allocation7 + $0x2] ss:$0 sm:$0xff] }
  0x46   :  { %621 = vmatpush3.bf16.msra.mxu0 %v707_v5  ;;  %641 = vmatpush3.bf16.msra.mxu1 %v715_v10 }
  0x47   :  { %622 = vmatprep.subr.bf16.mxu0 %v837_v0  ;;  %642 = vmatprep.subr.bf16.mxu1 %v837_v0 }
  0x4a   :  { %623 = vmatpush3.bf16.msra.mxu0 %v708_v7  ;;  %643 = vmatpush3.bf16.msra.mxu1 %v716_v12 }
  0x4b   :  { %624 = vmatprep.subr.bf16.mxu0 %v837_v0  ;;  %644 = vmatprep.subr.bf16.mxu1 %v837_v0 }
  0x4e   :  { %625 = vmatpush3.bf16.msra.mxu0 %v709_v9  ;;  %645 = vmatpush3.bf16.msra.mxu1 %v717_v16  ;;  %v569_v9 = vld [vmem:[#allocation7 + $0x3] ss:$0 sm:$0xff] }
  0x4f   :  { %626 = vmatprep.subr.bf16.mxu0 %v837_v0  ;;  %646 = vmatprep.subr.bf16.mxu1 %v837_v0 }
  0x52   :  { %627 = vmatpush3.bf16.msra.mxu0 %v710_v11  ;;  %647 = vmatpush3.bf16.msra.mxu1 %v718_v18 }
  0x53   :  { %628 = vmatprep.subr.bf16.mxu0 %v837_v0  ;;  %648 = vmatprep.subr.bf16.mxu1 %v837_v0 }
  0x56   :  { %629 = vmatpush3.bf16.msra.mxu0 %v711_v13  ;;  %649 = vmatpush3.bf16.msra.mxu1 %v719_v19 }
  0x57   :  { %654 = vmatprep.subr.bf16.mxu0 %v837_v0  ;;  %674 = vmatprep.subr.bf16.mxu1 %v837_v0 }
  0x59   :  { %631 = vmatmul.mubr.bf16.vlgmr.msra.gmra.mrb[0].mxu0 %v57_v17 }
  0x5a   :  { %670 = vmatprep.mubr.msk.bf16.mxu0 %vm838_vm0, %v837_v0  ;;  %655 = vmatpush3.bf16.msra.mxu0 %v720_v20 }
  0x5b   :  { %656 = vmatprep.subr.bf16.mxu0 %v837_v0 }
  0x5e   :  { %657 = vmatpush3.bf16.msra.mxu0 %v721_v21 }
  0x5f   :  { %658 = vmatprep.subr.bf16.mxu0 %v837_v0 }
  0x62   :  { %659 = vmatpush3.bf16.msra.mxu0 %v722_v22 }
  0x63   :  { %660 = vmatprep.subr.bf16.mxu0 %v837_v0 }
  0x66   :  { %661 = vmatpush3.bf16.msra.mxu0 %v723_v23 }
  0x67   :  { %662 = vmatprep.subr.bf16.mxu0 %v837_v0 }
  0x6a   :  { %663 = vmatpush3.bf16.msra.mxu0 %v724_v24 }
  0x6b   :  { %664 = vmatprep.subr.bf16.mxu0 %v837_v0 }
  0x6e   :  { %665 = vmatpush3.bf16.msra.mxu0 %v725_v25 }
  0x6f   :  { %666 = vmatprep.subr.bf16.mxu0 %v837_v0 }
  0x72   :  { %667 = vmatpush3.bf16.msra.mxu0 %v726_v38 }
  0x73   :  { %668 = vmatprep.subr.bf16.mxu0 %v837_v0 }
  0x76   :  { %669 = vmatpush3.bf16.msra.mxu0 %v727_v39 }
 0x12c   :  { %v161_v27 = vpop.f32.mrb[0].mxu0 }
 0x12d   :  { %v162_v28 = vadd.f32 %v542_v26, %v161_v27  ;;  %v632_v29 = vpop.f32.mrb[1].mxu0 }
 0x12e   :  { %v164_v30 = vpop.f32.mrb[2].mxu0 }
 0x12f   :  { %v170_v31 = vmul.f32 0.01, %v162_v28  ;;  %v165_v32 = vadd.f32 %v542_v26, %v164_v30  ;;  %v633_v33 = vpop.f32.mrb[3].mxu0  ;;  %vm168_vm1 = vcmp.gt.f32.partialorder %v162_v28, 0.0 }
 0x131   :  { %vm169_vm2 = vcmp.gt.f32.partialorder %v165_v32, 0.0  ;;  %v171_v34 = vmul.f32 0.01, %v165_v32  ;;  %v172_v35 = vsel %vm168_vm1, %v162_v28, %v170_v31 }
 0x133   :  { %v173_v36 = vsel %vm169_vm2, %v165_v32, %v171_v34 }
 0x134   :  { %v174_v37 = vpack.c.bf16 %v173_v36, %v172_v35 }
 0x136   :  { %651 = vmatmul.mubr.bf16.vlgmr.msra.gmra.mrb[0].mxu1 %v174_v37 }
 0x137   :  { %690 = vmatprep.mubr.msk.bf16.mxu1 %vm838_vm0, %v837_v0  ;;  %675 = vmatpush3.bf16.msra.mxu1 %v728_v40 }
 0x138   :  { %676 = vmatprep.subr.bf16.mxu1 %v837_v0 }
 0x13b   :  { %677 = vmatpush3.bf16.msra.mxu1 %v729_v41 }
 0x13c   :  { %678 = vmatprep.subr.bf16.mxu1 %v837_v0 }
 0x13f   :  { %679 = vmatpush3.bf16.msra.mxu1 %v730_v42 }
 0x140   :  { %680 = vmatprep.subr.bf16.mxu1 %v837_v0 }
 0x143   :  { %681 = vmatpush3.bf16.msra.mxu1 %v731_v43 }
 0x144   :  { %682 = vmatprep.subr.bf16.mxu1 %v837_v0 }
 0x147   :  { %683 = vmatpush3.bf16.msra.mxu1 %v732_v44 }
 0x148   :  { %684 = vmatprep.subr.bf16.mxu1 %v837_v0 }
 0x14b   :  { %685 = vmatpush3.bf16.msra.mxu1 %v733_v45 }
 0x14c   :  { %686 = vmatprep.subr.bf16.mxu1 %v837_v0 }
 0x14f   :  { %687 = vmatpush3.bf16.msra.mxu1 %v734_v58 }
 0x150   :  { %688 = vmatprep.subr.bf16.mxu1 %v837_v0 }
 0x153   :  { %689 = vmatpush3.bf16.msra.mxu1 %v735_v59 }
 0x209   :  { %v279_v47 = vpop.f32.mrb[0].mxu1 }
 0x20a   :  { %v280_v48 = vadd.f32 %v551_v46, %v279_v47  ;;  %v652_v49 = vpop.f32.mrb[1].mxu1 }
 0x20b   :  { %v282_v50 = vpop.f32.mrb[2].mxu1 }
 0x20c   :  { %v288_v51 = vmul.f32 0.01, %v280_v48  ;;  %v283_v52 = vadd.f32 %v551_v46, %v282_v50  ;;  %v653_v53 = vpop.f32.mrb[3].mxu1  ;;  %vm286_vm3 = vcmp.gt.f32.partialorder %v280_v48, 0.0 }
 0x20e   :  { %vm287_vm4 = vcmp.gt.f32.partialorder %v283_v52, 0.0  ;;  %v289_v54 = vmul.f32 0.01, %v283_v52  ;;  %v290_v55 = vsel %vm286_vm3, %v280_v48, %v288_v51 }
 0x210   :  { %v291_v56 = vsel %vm287_vm4, %v283_v52, %v289_v54 }
 0x211   :  { %v292_v57 = vpack.c.bf16 %v291_v56, %v290_v55 }
 0x213   :  { %671 = vmatmul.mubr.bf16.vlgmr.msra.gmra.mrb[4].mxu0 %v292_v57 }
 0x2e6   :  { %v397_v61 = vpop.f32.mrb[4].mxu0 }
 0x2e7   :  { %v398_v62 = vadd.f32 %v560_v60, %v397_v61  ;;  %v672_v63 = vpop.f32.mrb[5].mxu0 }
 0x2e8   :  { %v400_v1 = vpop.f32.mrb[6].mxu0 }
 0x2e9   :  { %v406_v2 = vmul.f32 0.01, %v398_v62  ;;  %v401_v3 = vadd.f32 %v560_v60, %v400_v1  ;;  %v673_v4 = vpop.f32.mrb[7].mxu0  ;;  %vm404_vm5 = vcmp.gt.f32.partialorder %v398_v62, 0.0 }
 0x2eb   :  { %vm405_vm6 = vcmp.gt.f32.partialorder %v401_v3, 0.0  ;;  %v407_v5 = vmul.f32 0.01, %v401_v3  ;;  %v408_v6 = vsel %vm404_vm5, %v398_v62, %v406_v2 }
 0x2ed   :  { %v409_v7 = vsel %vm405_vm6, %v401_v3, %v407_v5 }
 0x2ee   :  { %v410_v8 = vpack.c.bf16 %v409_v7, %v408_v6 }
 0x2f0   :  { %691 = vmatmul.mubr.bf16.vlgmr.msra.gmra.mrb[4].mxu1 %v410_v8 }
 0x3c3   :  { %v515_v10 = vpop.f32.mrb[4].mxu1 }
 0x3c4   :  { %v516_v0 = vadd.f32 %v569_v9, %v515_v10  ;;  %v692_v11 = vpop.f32.mrb[5].mxu1 }
 0x3c5   :  { %v518_v12 = vpop.f32.mrb[6].mxu1 }
 0x3c6   :  { %522 = vst [vmem:[#allocation8] sm:$0xff] %v516_v0  ;;  %v519_v13 = vadd.f32 %v569_v9, %v518_v12  ;;  %v693_v14 = vpop.f32.mrb[7].mxu1 }
 0x3c8   :  { %523 = vst [vmem:[#allocation8 + $0x8] sm:$0xff] %v519_v13 }
 0x3c9   :  { %813 = shalt.err (!%p810_p0)
}
 0x3ca   :  { %s814_s27 = scalar_lea.hbm %s957_s3, 256 }
 0x3cb   :  { %p815_p1 = scmp.ne.s32.totalorder %s957_s3, %s814_s27  ;;  %p818_p2 = scmp.lt.u32.totalorder %s814_s27, %s957_s3 }
 0x3cd   :  { %p820_p3 = pnand %p818_p2, %p815_p1 }
 0x3cf   :  { %823 = shalt.err (!%p820_p3)
}
 0x3d0   :  { %535 = dma.vmem_to_hbm [thread:$0]  %s530_s23, 256, %s957_s3, [#allocation4], %s834_s1, %s834_s1, %s835_s9  }
 0x3d1   :  { %828 = dma.done.wait [#allocation4], 256  }
 0x3d2   :  { %829 = vsyncadd [#allocation4], 4294967040 }
 0x3d3   :  { %539 = vsyncpa [#allocation3], 1 }
 0x3d4   :  { %540 = vsyncpa [#allocation6], 1 }
 0x3d5   :  { %541 = vsyncpa [#allocation4], 1 }

</bundles_post_ra>
